<compile_context>
chip_gen: v6e
topology: v6e:2x2x1
jax: 0.10.0
libtpu: 0.0.40
codegen_flags: <defaults>
</compile_context>

<pallas_src>
import functools

import jax
import jax.numpy as jnp
from jax.experimental import pallas as pl
from jax.experimental.pallas import tpu as pltpu


# ----------------------------------------------------------------------------
# Kernel
# ----------------------------------------------------------------------------
def _embedding_kernel(x_ref, row0_ref, emb_ref, o_ref):
    # x_ref:    (bb, N, F)   batch tile of patch features
    # row0_ref: (1, F)       token + embedding[0]   (precomputed in wrapper)
    # emb_ref:  (N, F)       embedding[1:]          (precomputed in wrapper)
    # o_ref:    (bb, N+1, F)
    bb, _, f = x_ref.shape

    # Rows 1..N: pure broadcast-add, stored straight into the output slab
    # (no intermediate concatenated tile).
    o_ref[:, 1:, :] = (x_ref[...] + emb_ref[...][None, :, :]).astype(o_ref.dtype)

    # Row 0: pre-combined class-token row broadcast over the batch tile.
    first = jnp.broadcast_to(row0_ref[...].reshape(1, 1, f), (bb, 1, f))
    o_ref[:, 0:1, :] = first.astype(o_ref.dtype)


# ----------------------------------------------------------------------------
# Wrapper
# ----------------------------------------------------------------------------
def _pick_batch_block(B, N, F, dtype_bytes, target_block_bytes=2 << 20):
    """Largest divisor of B whose output block is ~target_block_bytes, with
    at least 2 grid steps when B > 1 (pipelining / v7x dual-TC)."""
    per_b_out = (N + 1) * F * dtype_bytes       # output block dominates input
    bb = int(max(1, min(B, target_block_bytes // max(per_b_out, 1))))
    while B % bb:
        bb -= 1
    if bb == B and B > 1:                       # guarantee >= 2 grid steps
        bb = B // 2
        while B % bb:
            bb -= 1
    return max(bb, 1)


def embedding_forward_pallas(x, token, embedding, *, batch_block=None):
    """x: (B, N, F), token: (1, 1, F), embedding: (1, N+1, F) -> (B, N+1, F)."""
    assert x.ndim == 3, x.shape
    B, N, F = x.shape
    assert token.shape == (1, 1, F), token.shape
    assert embedding.shape == (1, N + 1, F), embedding.shape

    out_dtype = x.dtype
    tok = token.astype(out_dtype)
    emb = embedding.astype(out_dtype)

    # One-time XLA-side prep (tiny): fold the token add into row 0 and split
    # off the +1-misaligned first embedding row.
    row0 = tok[:, 0, :] + emb[:, 0, :]          # (1, F)
    emb_rest = emb[0, 1:, :]                    # (N, F)

    dtype_bytes = jnp.dtype(out_dtype).itemsize
    if batch_block is None:
        batch_block = _pick_batch_block(B, N, F, dtype_bytes)
    assert B % batch_block == 0, (B, batch_block)
    grid = (B // batch_block,)

    bytes_accessed = (B * N * F + N * F + F + B * (N + 1) * F) * dtype_bytes
    cost = pl.CostEstimate(flops=B * (N + 1) * F, transcendentals=0,
                           bytes_accessed=bytes_accessed)

    return pl.pallas_call(
        _embedding_kernel,
        out_shape=jax.ShapeDtypeStruct((B, N + 1, F), out_dtype),
        grid=grid,
        in_specs=[
            pl.BlockSpec((batch_block, N, F), lambda i: (i, 0, 0)),
            pl.BlockSpec((1, F), lambda i: (0, 0)),
            pl.BlockSpec((N, F), lambda i: (0, 0)),
        ],
        out_specs=pl.BlockSpec((batch_block, N + 1, F), lambda i: (i, 0, 0)),
        compiler_params=pltpu.CompilerParams(
            dimension_semantics=("parallel",)),
        cost_estimate=cost,
    )(x, row0, emb_rest)


# Pure-JAX reference (mirrors the PyTorch forward; also the tiny-size path).
def embedding_reference(x, token, embedding):
    B = x.shape[0]
    tokens = jnp.broadcast_to(token, (B, 1, token.shape[-1])).astype(x.dtype)
    out = jnp.concatenate([tokens, x], axis=1) + embedding.astype(x.dtype)
    return out.astype(x.dtype)


_SMALL_BYTES = 256 * 1024


def embedding_forward(x, token, embedding, *, batch_block=None, force_pallas=False):
    """Auto-dispatch: tiny problems go to XLA (launch cost dwarfs the work)."""
    B, N, F = x.shape
    total_out_bytes = B * (N + 1) * F * jnp.dtype(x.dtype).itemsize
    if not force_pallas and total_out_bytes < _SMALL_BYTES:
        return embedding_reference(x, token, embedding)
    return embedding_forward_pallas(x, token, embedding, batch_block=batch_block)


# ----------------------------------------------------------------------------
if __name__ == "__main__":
    B = 2
    NUM_PATCHES = 16
    FEATURES = 32

    key = jax.random.PRNGKey(0)
    kx, kt, ke = jax.random.split(key, 3)

    x = jax.random.normal(kx, (B, NUM_PATCHES, FEATURES), jnp.float32)
    token = jax.random.normal(kt, (1, 1, FEATURES), jnp.float32)
    embedding = jax.random.normal(ke, (1, NUM_PATCHES + 1, FEATURES), jnp.float32)

    # Exercise the Pallas kernel explicitly (batch-tiled: grid has 2 steps).
    fwd = jax.jit(functools.partial(embedding_forward, force_pallas=True))
    y = jax.block_until_ready(fwd(x, token, embedding))

    assert y.shape == (B, NUM_PATCHES + 1, FEATURES), y.shape
    assert bool(jnp.all(jnp.isfinite(y)))

    y_ref = embedding_reference(x, token, embedding)
    assert bool(jnp.allclose(y, y_ref, atol=1e-6, rtol=1e-6))

    # Auto-dispatch path (falls back to fused XLA at this tiny size) agrees too.
    y_auto = jax.block_until_ready(jax.jit(embedding_forward)(x, token, embedding))
    assert bool(jnp.allclose(y_auto, y_ref, atol=1e-6, rtol=1e-6))

    print("KERNEL_OK")
</pallas_src>

<mosaic_0001>
module attributes {stable_mosaic.version = 11 : i64} {
  func.func @_embedding_kernel(%arg0: i32, %arg1: memref<1x16x32xf32, #tpu.memory_space<vmem>>, %arg2: memref<1x32xf32, #tpu.memory_space<vmem>>, %arg3: memref<16x32xf32, #tpu.memory_space<vmem>>, %arg4: memref<1x17x32xf32, #tpu.memory_space<vmem>>) attributes {dimension_semantics = [#tpu.dimension_semantics<parallel>], iteration_bounds = array<i64: 2>, scalar_prefetch = 0 : i64, scratch_operands = 0 : i64, tpu.core_type = #tpu.core_type<tc>, window_params = [{transform_indices = @transform_0, window_bounds = array<i64: 1, 16, 32>}, {pipeline_mode = #tpu.pipeline_mode<synchronous>, transform_indices = @transform_1, window_bounds = array<i64: 1, 32>}, {pipeline_mode = #tpu.pipeline_mode<synchronous>, transform_indices = @transform_2, window_bounds = array<i64: 16, 32>}, {transform_indices = @transform_3, window_bounds = array<i64: 1, 17, 32>}]} {
    %c0 = arith.constant 0 : index
    %c0_0 = arith.constant 0 : index
    %c0_1 = arith.constant 0 : index
    %0 = vector.load %arg1[%c0, %c0_0, %c0_1] : memref<1x16x32xf32, #tpu.memory_space<vmem>>, vector<1x16x32xf32>
    %c0_2 = arith.constant 0 : index
    %c0_3 = arith.constant 0 : index
    %1 = vector.load %arg3[%c0_2, %c0_3] : memref<16x32xf32, #tpu.memory_space<vmem>>, vector<16x32xf32>
    %2 = vector.shape_cast %1 : vector<16x32xf32> to vector<1x16x32xf32>
    %3 = arith.addf %0, %2 : vector<1x16x32xf32>
    %c0_4 = arith.constant 0 : index
    %c1 = arith.constant 1 : index
    %c0_5 = arith.constant 0 : index
    %4 = vector.load %arg4[%c0_4, %c1, %c0_5] : memref<1x17x32xf32, #tpu.memory_space<vmem>>, vector<1x16x32xf32>
    tpu.vector_store %arg4[%c0_4, %c1, %c0_5], %3 {strides = array<i32>} : memref<1x17x32xf32, #tpu.memory_space<vmem>>, vector<1x16x32xf32>,
    %c0_6 = arith.constant 0 : index
    %c0_7 = arith.constant 0 : index
    %5 = vector.load %arg2[%c0_6, %c0_7] : memref<1x32xf32, #tpu.memory_space<vmem>>, vector<1x32xf32>
    %6 = vector.shape_cast %5 : vector<1x32xf32> to vector<1x1x32xf32>
    %c0_8 = arith.constant 0 : index
    %c0_9 = arith.constant 0 : index
    %c0_10 = arith.constant 0 : index
    %7 = vector.load %arg4[%c0_8, %c0_9, %c0_10] : memref<1x17x32xf32, #tpu.memory_space<vmem>>, vector<1x1x32xf32>
    tpu.vector_store %arg4[%c0_8, %c0_9, %c0_10], %6 {strides = array<i32>} : memref<1x17x32xf32, #tpu.memory_space<vmem>>, vector<1x1x32xf32>,
    return
  }
  func.func @transform_0(%arg0: i32) -> (i32, i32, i32) {
    %c0_i32 = arith.constant 0 : i32
    %c0_i32_0 = arith.constant 0 : i32
    %c0_i32_1 = arith.constant 0 : i32
    return %arg0, %c0_i32, %c0_i32_0 : i32, i32, i32
  }
  func.func @transform_1(%arg0: i32) -> (i32, i32) {
    %c0_i32 = arith.constant 0 : i32
    %c0_i32_0 = arith.constant 0 : i32
    %c0_i32_1 = arith.constant 0 : i32
    return %c0_i32, %c0_i32_0 : i32, i32
  }
  func.func @transform_2(%arg0: i32) -> (i32, i32) {
    %c0_i32 = arith.constant 0 : i32
    %c0_i32_0 = arith.constant 0 : i32
    %c0_i32_1 = arith.constant 0 : i32
    return %c0_i32, %c0_i32_0 : i32, i32
  }
  func.func @transform_3(%arg0: i32) -> (i32, i32, i32) {
    %c0_i32 = arith.constant 0 : i32
    %c0_i32_0 = arith.constant 0 : i32
    %c0_i32_1 = arith.constant 0 : i32
    return %arg0, %c0_i32, %c0_i32_0 : i32, i32, i32
  }
}

</mosaic_0001>

<bundles_post_ra>
// kernel: embedding_forward.1
= control target key start
LH: loop header
LB: loop body
LE: loop exit
PB: predicated region body
PF: predicated region fallthrough
CT: control target
= control target key end

     0   :  { %8 = vsyncpa [#allocation3], 0  ;;  %s521_s0 = inlined_call_operand.hbm [shape: f32[2,16,32], index: 0, kind: input, shape index: {}]   ;;  %s522_s1 = inlined_call_operand.vmem [shape: f32[1,32], index: 1, kind: input, shape index: {}]   ;;  %s523_s2 = inlined_call_operand.vmem [shape: f32[16,32], index: 2, kind: input, shape index: {}]   ;;  %s524_s3 = inlined_call_operand.vmem [shape: f32[2,17,32], index: 3, kind: output, shape index: {}]  }
   0x1   :  { %10 = vsyncpa [#allocation3 + $0x1], 0  ;;  %s411_s12 = smov 0   ;;  %s413_s13 = smov 0  }
   0x2   :  { %s415_s14 = smov 0   ;;  %s417_s15 = smov 0  }
   0x3 LB: > { %s430_s16 = sadd.s32 4294967295, %s386_s15   ;;  %s433_s17 = sadd.s32 1, %s386_s15   ;;  %s386_s15 = sphi %s417_s15, %s533_s15   ;;  %s382_s14 = sphi %s415_s14, %s532_s14   ;;  %s378_s13 = sphi %s413_s13, %s531_s13   ;;  %s374_s12 = sphi %s411_s12, %s530_s12  }
   0x4   : > { %s20_s18 = ssub.s32 %s386_s15, %s433_s17  ;;  %s23_s19 = sadd.s32 1, %s382_s14 }
   0x5   : > { %p21_p0 = scmp.eq.s32.totalorder %s20_s18, 0  ;;  %p30_p1 = scmp.ne.s32.totalorder %s382_s14, %s378_s13 }
   0x6   : > { %p31_p2 = scmp.eq.s32.totalorder %s386_s15, 0  ;;  %p36_p3 = scmp.ne.s32.totalorder %s378_s13, %s374_s12 }
   0x7   : > { %s443_s20 = scalar_select %p21_p0, %s382_s14, %s23_s19  }
   0x8   : > { %p32_p4 = por %p31_p2, %p30_p1  ;;  %p37_p5 = scmp.eq.s32.totalorder %s430_s16, 0 }
   0x9   : > { %p289_p6 = scmp.lt.s32.totalorder %s386_s15, 2  ;;  %s134_s22 = sand.u32 1, %s382_s14  }
   0xa   : > { %p447_p7 = por %p37_p5, %p36_p3  ;;  %s273_s23 = sshll.u32 %s134_s22, 4 }
   0xb   : > { %s281_s24 = sshll.u32 %s386_s15, 8  ;;  %s138_s28 = scalar_lea.vmem [#allocation2], %s273_s23 }
   0xc   : > { %s526_s21 = scalar_select %p447_p7, 1, 0 }
   0xd   : > { %s456_s27 = scalar_lea.hbm %s521_s0, %s281_s24  ;;  %s145_s29 = sshll.u32 %s138_s28, 4  ;;  %s458_s29 = int_to_ptr.vmem [resolvable:$true] %s145_s29 }
   0xe   : > { %p460_p8 = pnand %p289_p6, %p32_p4  ;;  %s465_s4 = scalar_lea.sflag [#allocation3], %s134_s22 }
   0xf   : > { %s324_s5 = scalar_lea.hbm %s456_s27, 256  ;;  %s329_s8 = scalar_lea.hbm %s521_s0, 512 }
  0x10   : > { %p325_p10 = scmp.ne.s32.totalorder %s456_s27, %s324_s5  ;;  %p326_p11 = pneg %p460_p8 }
  0x11   : > { %p330_p0 = scmp.lt.s32.totalorder %s456_s27, %s521_s0  ;;  %p331_p1 = scmp.lt.s32.totalorder %s329_s8, %s324_s5 }
  0x12   : > { %p327_p12 = pnand %p326_p11, %p325_p10 }
  0x13   : > { %p332_p2 = por %p331_p1, %p330_p0 }
  0x14   : > { %p328_p13 = pneg %p327_p12 }
  0x16   : > { %p333_p3 = pnand %p332_p2, %p328_p13 }
  0x18   : > { %336 = shalt.err (!%p333_p3)
}
  0x19   : > { %s337_s11 = scalar_lea.vmem %s458_s29, 256  ;;  %s388_s12 = smov [#allocation2]  }
  0x1a   : > { %p338_p4 = scmp.ne.s32.totalorder %s458_s29, %s337_s11  ;;  %s342_s18 = sshll.u32 %s388_s12, 4  ;;  %s343_s18 = int_to_ptr.vmem [resolvable:$false] %s342_s18 }
  0x1b   : > { %s344_s19 = scalar_lea.vmem %s343_s18, 512  ;;  %p345_p10 = scmp.lt.s32.totalorder %s458_s29, %s343_s18 }
  0x1c   : > { %p340_p5 = pnand %p338_p4, %p326_p11  ;;  %p346_p12 = scmp.lt.s32.totalorder %s344_s19, %s337_s11 }
  0x1e   : > { %p341_p6 = pneg %p340_p5  ;;  %p347_p9 = por %p346_p12, %p345_p10 }
  0x20   : > { %p348_p7 = pnand %p347_p9, %p341_p6 }
  0x22   : > { %351 = shalt.err (!%p348_p7)
}
  0x23   : > { %s389_s22 = smov 128   ;;  %s390_s23 = smov 8  }
  0x24   : > { %288 = dma.hbm_to_vmem [thread:$0]  (!%p460_p8), %s456_s27, 256, %s458_s29, %s465_s4, %s389_s22, %s389_s22, %s390_s23  }
  0x25   : > { %p153_p11 = scmp.lt.s32.totalorder %s386_s15, 3  ;;  %p528_p13 = scmp.ge.s32.totalorder %s386_s15, 1 }
  0x27   : > { %p154_p0 = pnand %p528_p13, %p153_p11 }
  0x28   : > { %s159_s24 = sand.u32 (!%p154_p0), 1, %s378_s13   ;;  %p529_p7 = scmp.ne.s32.totalorder (!%p154_p0), %s526_s21, 0 }
  0x29   : > { %157 = sbr.rel (%p154_p0) target bundleno = 55 (0x37), region = 32  ;;  %s277_s25 = sshll.u32 (!%p154_p0), %s159_s24, 4 }
  0x2a   : > { %s160_s26 = scalar_lea.sflag (!%p154_p0), [#allocation3], %s159_s24  ;;  %s163_s28 = scalar_lea.vmem (!%p154_p0), [#allocation2], %s277_s25 }
  0x2e   : > { %369 = dma.done.wait (%p529_p7), %s160_s26, 256  }
  0x2f   : > { %371 = vsyncadd (%p529_p7), %s160_s26, 4294967040  ;;  %p186_p9 = scmp.lt.s32.totalorder %s430_s16, 1  ;;  %vm201_vm0 = vcmask 253952   ;;  %v191_v0 = vld [vmem:[%s163_s28] sm:$0xff]  ;;  %vm197_vm1 = vcmask 261120   ;;  %v192_v2 = vld [vmem:[%s163_s28 + $0x8] sm:$0xff] }
  0x30   : > { %v193_v1 = vld [vmem:[%s523_s2] sm:$0xff]  ;;  %v194_v4 = vld [vmem:[%s523_s2 + $0x8] sm:$0xff] }
  0x31   : > { %s535_s16 = smov (!%p186_p9, %s430_s16), 1  ;;  %v195_v3 = vadd.f32 %v193_v1, %v191_v0  ;;  %v200_v5 = vld [vmem:[%s522_s1] sm:$0x1]  ;;  %v196_v6 = vadd.f32 %v194_v4, %v192_v2 }
  0x32   : > { %s282_s27 = smul.u32 24, %s535_s16 }
  0x34   : > { %s190_s30 = scalar_lea.vmem %s524_s3, %s282_s27 }
  0x35   : > { %202 = vst.msk [vmem:[%s190_s30] sm:$0x1] %vm201_vm0, %v200_v5 }
  0x36   : > { %198 = vst.msk [vmem:[%s190_s30 + $0x1] sm:$0xff] %vm197_vm1, %v195_v3  ;;  %199 = vst.msk [vmem:[%s190_s30 + $0x9] sm:$0xff] %vm197_vm1, %v196_v6 }
  0x37 PF: > { %p13_p8 = scmp.ge.s32.totalorder %s433_s17, 4   ;;  %s530_s12 = smov %s378_s13 }
  0x38   : > { %s531_s13 = smov %s382_s14  ;;  %s532_s14 = smov %s443_s20 }
  0x39   : > { %s533_s15 = smov %s433_s17  ;;  %15 = sbr.rel (!%p13_p8) target bundleno = 3 (0x3), region = 72 }
  0x3e   :  { %224 = vsyncpa [#allocation3], 1 }
  0x3f   :  { %226 = vsyncpa [#allocation3 + $0x1], 1 }

</bundles_post_ra>
